<compile_context>
chip_gen: v5e
topology: v5e:2x2
jax: 0.10.0
libtpu: 0.0.40
codegen_flags: <defaults>
</compile_context>

<pallas_src>
import jax
import jax.numpy as jnp
from jax.experimental import pallas as pl
from jax.experimental.pallas import tpu as pltpu


def _soft_ce_kernel(w2_ref, logits_ref, smooth_ref, out_ref):
    x = logits_ref[...].astype(jnp.float32)              # (1, C, T)
    # numerically stable log-softmax over the class (sublane) axis
    m = jnp.max(x, axis=1, keepdims=True)                 # (1, 1, T)
    z = x - m
    lse = jnp.log(jnp.sum(jnp.exp(z), axis=1, keepdims=True))
    logp = z - lse                                         # (1, C, T)

    w2 = w2_ref[...].astype(jnp.float32)[None, :, :]       # (1, C, 1)
    soft = smooth_ref[...].astype(jnp.float32)             # (1, C, T)
    # cross_entropy_with_probs, reduction='none'
    out_ref[...] = -jnp.sum(soft * logp * w2, axis=1, keepdims=True)


def _choose_tile(hw, c, in_itemsize, max_tile=4096,
                 vmem_budget=8 * 1024 * 1024):
    """Largest lane tile (multiple of 128, divides hw, <= max_tile) whose
    double-buffered working set fits in vmem_budget (safe for v5e's 16 MiB
    scoped default and v7x's smaller physical VMEM)."""
    assert hw % 128 == 0, "H*W must be a multiple of 128"
    # 2 class-major input streams + 1 f32 output stream, double-buffered.
    bytes_per_lane = 2 * c * in_itemsize * 2 + 2 * 4
    best = 128
    t = 128
    while t <= min(hw, max_tile):
        if hw % t == 0 and t * bytes_per_lane <= vmem_budget:
            best = t
        t += 128
    return best


def _soft_pixel_losses(logits, smooth_labels, weight2, ignore_label):
    """Flat (B*H*W,) soft-label CE map, computed in one Pallas kernel."""
    B, C, H, W = logits.shape
    HW = H * W
    tile = _choose_tile(HW, C, jnp.dtype(logits.dtype).itemsize)

    # NCHW is already class-major per batch; these reshapes are free.
    logits3 = logits.reshape(B, C, HW)
    smooth3 = smooth_labels.reshape(B, C, HW)

    w2 = (jnp.ones((C,), jnp.float32) if weight2 is None
          else weight2.astype(jnp.float32))
    # A class equal to the ignored index contributes nothing
    # (no-op for ignore_label = -1, matches cross_entropy_with_probs).
    w2_eff = jnp.where(jnp.arange(C) == ignore_label, 0.0, w2).reshape(C, 1)

    grid = (B, HW // tile)

    out = pl.pallas_call(
        _soft_ce_kernel,
        out_shape=jax.ShapeDtypeStruct((B, 1, HW), jnp.float32),
        grid=grid,
        in_specs=[
            pl.BlockSpec((C, 1), lambda b, i: (0, 0)),            # weight2
            pl.BlockSpec((1, C, tile), lambda b, i: (b, 0, i)),   # logits
            pl.BlockSpec((1, C, tile), lambda b, i: (b, 0, i)),   # smooth lbls
        ],
        out_specs=pl.BlockSpec((1, 1, tile), lambda b, i: (b, 0, i)),
        compiler_params=pltpu.CompilerParams(
            dimension_semantics=("parallel", "parallel")),
    )(w2_eff, logits3, smooth3)

    return out.reshape(-1)


def deeplab_ce_forward(logits, labels, smooth_labels, weight2=None,
                       ignore_label=-1, top_k_percent_pixels=1.0):
    """Faithful port of DeepLabCE.forward (no 'semantic_weights' branch).

    `labels` is accepted for interface parity only: in the PyTorch module the
    hard-label CE map is computed but never contributes to the returned loss
    (only its element count, a static B*H*W, is used for the top-k size).
    """
    del labels  # see docstring
    pixel_losses_2 = _soft_pixel_losses(logits, smooth_labels, weight2,
                                        ignore_label)
    if top_k_percent_pixels == 1.0:
        return jnp.mean(pixel_losses_2)
    top_k_pixels = int(top_k_percent_pixels * pixel_losses_2.size)
    top_vals, _ = jax.lax.top_k(pixel_losses_2, top_k_pixels)
    return jnp.mean(top_vals)


def _reference(logits, labels, smooth_labels, weight2, ignore_label=-1,
               top_k_percent_pixels=1.0):
    """Pure-JAX reference mirroring the PyTorch forward, for validation."""
    del labels
    B, C, H, W = logits.shape
    logp = jax.nn.log_softmax(logits.astype(jnp.float32), axis=1)
    w2 = (jnp.ones((C,), jnp.float32) if weight2 is None
          else weight2.astype(jnp.float32))
    w2 = jnp.where(jnp.arange(C) == ignore_label, 0.0, w2)
    soft = -jnp.sum(smooth_labels.astype(jnp.float32) * logp
                    * w2[None, :, None, None], axis=1)
    soft_flat = soft.reshape(-1)
    if top_k_percent_pixels == 1.0:
        return jnp.mean(soft_flat)
    k = int(top_k_percent_pixels * soft_flat.size)
    vals, _ = jax.lax.top_k(soft_flat, k)
    return jnp.mean(vals)


if __name__ == "__main__":
    key = jax.random.PRNGKey(0)
    B, C, H, W = 2, 4, 16, 16
    k1, k2, k3, k4 = jax.random.split(key, 4)

    logits = jax.random.normal(k1, (B, C, H, W), dtype=jnp.float32)
    labels = jax.random.randint(k2, (B, H, W), minval=0, maxval=C,
                                dtype=jnp.int32)
    ignore_mask = jax.random.bernoulli(k3, 0.1, (B, H, W))
    labels = jnp.where(ignore_mask, -1, labels)   # unused by the returned loss
    smooth_labels = jax.nn.softmax(
        jax.random.normal(k4, (B, C, H, W), dtype=jnp.float32), axis=1)
    weight2 = jnp.array([1.0, 0.5, 2.0, 1.5], dtype=jnp.float32)

    # mean path (top_k_percent_pixels == 1.0)
    out = deeplab_ce_forward(logits, labels, smooth_labels, weight2,
                             ignore_label=-1, top_k_percent_pixels=1.0)
    out = jax.block_until_ready(out)
    ref = _reference(logits, labels, smooth_labels, weight2,
                     ignore_label=-1, top_k_percent_pixels=1.0)
    assert jnp.allclose(out, ref, rtol=1e-5, atol=1e-6), (out, ref)

    # top-k path
    out_tk = deeplab_ce_forward(logits, labels, smooth_labels, weight2,
                                ignore_label=-1, top_k_percent_pixels=0.5)
    out_tk = jax.block_until_ready(out_tk)
    ref_tk = _reference(logits, labels, smooth_labels, weight2,
                        ignore_label=-1, top_k_percent_pixels=0.5)
    assert jnp.allclose(out_tk, ref_tk, rtol=1e-5, atol=1e-6), (out_tk, ref_tk)

    print("KERNEL_OK")
</pallas_src>

<mosaic_0001>
module attributes {stable_mosaic.version = 11 : i64} {
  func.func @_soft_ce_kernel(%arg0: i32, %arg1: i32, %arg2: memref<4x1xf32, #tpu.memory_space<vmem>>, %arg3: memref<1x4x256xf32, #tpu.memory_space<vmem>>, %arg4: memref<1x4x256xf32, #tpu.memory_space<vmem>>, %arg5: memref<1x1x256xf32, #tpu.memory_space<vmem>>) attributes {dimension_semantics = [#tpu.dimension_semantics<parallel>, #tpu.dimension_semantics<parallel>], iteration_bounds = array<i64: 2, 1>, scalar_prefetch = 0 : i64, scratch_operands = 0 : i64, tpu.core_type = #tpu.core_type<tc>, window_params = [{pipeline_mode = #tpu.pipeline_mode<synchronous>, transform_indices = @transform_0, window_bounds = array<i64: 4, 1>}, {transform_indices = @transform_1, window_bounds = array<i64: 1, 4, 256>}, {transform_indices = @transform_2, window_bounds = array<i64: 1, 4, 256>}, {transform_indices = @transform_3, window_bounds = array<i64: 1, 1, 256>}]} {
    %c0 = arith.constant 0 : index
    %c0_0 = arith.constant 0 : index
    %c0_1 = arith.constant 0 : index
    %0 = vector.load %arg3[%c0, %c0_0, %c0_1] : memref<1x4x256xf32, #tpu.memory_space<vmem>>, vector<1x4x256xf32>
    %cst = arith.constant dense<0xFF800000> : vector<1x256xf32>
    %1 = vector.multi_reduction <maximumf>, %0, %cst [1] : vector<1x4x256xf32> to vector<1x256xf32>
    %2 = vector.shape_cast %1 : vector<1x256xf32> to vector<1x1x256xf32>
    %3 = vector.broadcast %2 : vector<1x1x256xf32> to vector<1x4x256xf32>
    %4 = arith.subf %0, %3 : vector<1x4x256xf32>
    %5 = math.exp %4 : vector<1x4x256xf32>
    %cst_2 = arith.constant dense<0.000000e+00> : vector<1x256xf32>
    %6 = vector.multi_reduction <add>, %5, %cst_2 [1] : vector<1x4x256xf32> to vector<1x256xf32>
    %7 = vector.shape_cast %6 : vector<1x256xf32> to vector<1x1x256xf32>
    %8 = math.log %7 : vector<1x1x256xf32>
    %9 = vector.broadcast %8 : vector<1x1x256xf32> to vector<1x4x256xf32>
    %10 = arith.subf %4, %9 : vector<1x4x256xf32>
    %c0_3 = arith.constant 0 : index
    %c0_4 = arith.constant 0 : index
    %11 = vector.load %arg2[%c0_3, %c0_4] : memref<4x1xf32, #tpu.memory_space<vmem>>, vector<4x1xf32>
    %12 = vector.shape_cast %11 : vector<4x1xf32> to vector<1x4x1xf32>
    %c0_5 = arith.constant 0 : index
    %c0_6 = arith.constant 0 : index
    %c0_7 = arith.constant 0 : index
    %13 = vector.load %arg4[%c0_5, %c0_6, %c0_7] : memref<1x4x256xf32, #tpu.memory_space<vmem>>, vector<1x4x256xf32>
    %14 = arith.mulf %13, %10 : vector<1x4x256xf32>
    %15 = vector.broadcast %12 : vector<1x4x1xf32> to vector<1x4x256xf32>
    %16 = arith.mulf %14, %15 : vector<1x4x256xf32>
    %cst_8 = arith.constant dense<0.000000e+00> : vector<1x256xf32>
    %17 = vector.multi_reduction <add>, %16, %cst_8 [1] : vector<1x4x256xf32> to vector<1x256xf32>
    %18 = vector.shape_cast %17 : vector<1x256xf32> to vector<1x1x256xf32>
    %cst_9 = arith.constant 0.000000e+00 : f32
    %19 = vector.broadcast %cst_9 : f32 to vector<1x1x256xf32>
    %20 = arith.subf %19, %18 : vector<1x1x256xf32>
    %c0_10 = arith.constant 0 : index
    %c0_11 = arith.constant 0 : index
    %c0_12 = arith.constant 0 : index
    %21 = vector.load %arg5[%c0_10, %c0_11, %c0_12] : memref<1x1x256xf32, #tpu.memory_space<vmem>>, vector<1x1x256xf32>
    tpu.vector_store %arg5[%c0_10, %c0_11, %c0_12], %20 {strides = array<i32>} : memref<1x1x256xf32, #tpu.memory_space<vmem>>, vector<1x1x256xf32>,
    return
  }
  func.func @transform_0(%arg0: i32, %arg1: i32) -> (i32, i32) {
    %c0_i32 = arith.constant 0 : i32
    %c0_i32_0 = arith.constant 0 : i32
    %c0_i32_1 = arith.constant 0 : i32
    return %c0_i32, %c0_i32_0 : i32, i32
  }
  func.func @transform_1(%arg0: i32, %arg1: i32) -> (i32, i32, i32) {
    %c0_i32 = arith.constant 0 : i32
    %c0_i32_0 = arith.constant 0 : i32
    return %arg0, %c0_i32, %arg1 : i32, i32, i32
  }
  func.func @transform_2(%arg0: i32, %arg1: i32) -> (i32, i32, i32) {
    %c0_i32 = arith.constant 0 : i32
    %c0_i32_0 = arith.constant 0 : i32
    return %arg0, %c0_i32, %arg1 : i32, i32, i32
  }
  func.func @transform_3(%arg0: i32, %arg1: i32) -> (i32, i32, i32) {
    %c0_i32 = arith.constant 0 : i32
    %c0_i32_0 = arith.constant 0 : i32
    return %arg0, %c0_i32, %arg1 : i32, i32, i32
  }
}

</mosaic_0001>

<bundles_post_ra>
// kernel: tpu_custom_call.1
= control target key start
LH: loop header
LB: loop body
LE: loop exit
PB: predicated region body
PF: predicated region fallthrough
CT: control target
= control target key end

     0   :  { %8 = vsyncpa [#allocation3], 0  ;;  %s896_s0 = inlined_call_operand.vmem [shape: f32[4,1], index: 0, kind: input, shape index: {}]   ;;  %s897_s1 = inlined_call_operand.hbm [shape: f32[2,4,256], index: 1, kind: input, shape index: {}]   ;;  %s898_s2 = inlined_call_operand.hbm [shape: f32[2,4,256], index: 2, kind: input, shape index: {}]   ;;  %s899_s3 = inlined_call_operand.hbm [shape: f32[2,1,256], index: 3, kind: output, shape index: {}]  }
   0x1   :  { %10 = vsyncpa [#allocation3 + $0x1], 0 }
   0x2   :  { %11 = vsyncpa [#allocation6], 0 }
   0x3   :  { %13 = vsyncpa [#allocation6 + $0x1], 0 }
   0x4   :  { %14 = vsyncpa [#allocation4], 0 }
   0x5   :  { %16 = vsyncpa [#allocation4 + $0x1], 0  ;;  %s753_s12 = smov 0   ;;  %s755_s13 = smov 0  }
   0x6   :  { %s757_s14 = smov 0   ;;  %s759_s15 = smov 0  }
   0x7   :  { %s761_s16 = smov 0   ;;  %s763_s17 = smov 0  }
   0x8 LB: > { %s487_s18 = sadd.s32 4294967295, %s729_s17   ;;  %s488_s19 = sadd.s32 4294967294, %s729_s17   ;;  %s729_s17 = sphi %s763_s17, %s22_s17   ;;  %s725_s16 = sphi %s761_s16, %s908_s16   ;;  %s721_s15 = sphi %s759_s15, %s907_s15   ;;  %s717_s14 = sphi %s757_s14, %s906_s14   ;;  %s713_s13 = sphi %s755_s13, %s905_s13   ;;  %s709_s12 = sphi %s753_s12, %s904_s12  }
   0x9   : > { %s34_s20 = sadd.s32 1, %s725_s16  ;;  %s64_s21 = sadd.s32 1, %s717_s14 }
   0xa   : > { %p36_p0 = scmp.ge.s32.totalorder %s34_s20, 2  ;;  %p71_p1 = scmp.ne.s32.totalorder %s717_s14, %s713_s13 }
   0xb   : > { %p72_p2 = scmp.eq.s32.totalorder %s729_s17, 0  ;;  %p77_p3 = scmp.ne.s32.totalorder %s713_s13, %s709_s12 }
   0xc   : > { %s910_s20 = smov (%p36_p0, %s34_s20), 0  ;;  %p78_p5 = scmp.eq.s32.totalorder %s487_s18, 0 }
   0xd   : > { %p794_p4 = por %p72_p2, %p71_p1  ;;  %s59_s23 = ssub.s32 %s725_s16, %s910_s20 }
   0xe   : > { %p131_p6 = scmp.eq.s32.totalorder %s487_s18, 1  ;;  %p62_p7 = scmp.eq.s32.totalorder %s59_s23, 0 }
   0xf   : > { %p800_p8 = por %p78_p5, %p77_p3  ;;  %p137_p10 = scmp.eq.s32.totalorder %s488_s19, 1 }
  0x10   : > { %p804_p9 = por %p131_p6, %p71_p1  ;;  %p490_p12 = scmp.ge.s32.totalorder %s729_s17, 2 }
  0x11   : > { %s809_s26 = scalar_select %p62_p7, %s717_s14, %s64_s21  }
  0x12   : > { %p811_p11 = por %p137_p10, %p77_p3  ;;  %p524_p13 = scmp.lt.s32.totalorder %s729_s17, 2 }
  0x13   : > { %s160_s28 = sand.u32 1, %s717_s14   ;;  %s505_s30 = sshll.u32 %s725_s16, 3 }
  0x14   : > { %s491_s29 = sshll.u32 %s160_s28, 3  ;;  %s171_s6 = scalar_lea.hbm %s897_s1, %s505_s30 }
  0x15   : > { %s164_s7 = scalar_lea.vmem [#allocation2], %s491_s29  ;;  %s173_s9 = sshll.u32 %s171_s6, 4  ;;  %s174_s9 = int_to_ptr.hbm [resolvable:$true] %s173_s9 }
  0x16   : > { %s175_s8 = sshll.u32 %s164_s7, 4  ;;  %p514_p0 = pnand %p524_p13, %p794_p4  ;;  %s176_s8 = int_to_ptr.vmem [resolvable:$true] %s175_s8 }
  0x17   : > { %p497_p1 = scmp.ge.s32.totalorder %s729_s17, 1  ;;  %p202_p2 = scmp.lt.s32.totalorder %s729_s17, 3 }
  0x18   : > { %s161_s10 = scalar_lea.sflag [#allocation3], %s160_s28  ;;  %s193_s19 = scalar_lea.hbm %s898_s2, %s505_s30 }
  0x19   : > { %516 = dma.hbm_to_vmem [thread:$0]  (!%p514_p0), %s174_s9, 128, %s176_s8, %s161_s10  }
  0x1a   : > { %p203_p3 = pnand %p497_p1, %p202_p2  ;;  %s186_s21 = scalar_lea.vmem [#allocation5], %s491_s29 }
  0x1b   : > { %s197_s23 = sshll.u32 %s186_s21, 4  ;;  %s195_s4 = sshll.u32 %s193_s19, 4  ;;  %s198_s23 = int_to_ptr.vmem [resolvable:$true] %s197_s23  ;;  %s196_s4 = int_to_ptr.hbm [resolvable:$true] %s195_s4 }
  0x1c   : > { %s183_s5 = scalar_lea.sflag [#allocation6], %s160_s28  ;;  %206 = sbr.rel (%p203_p3) target bundleno = 186 (0xba), region = 32 }
  0x1d   : > { %519 = dma.hbm_to_vmem [thread:$0]  (!%p514_p0), %s196_s4, 128, %s198_s23, %s183_s5  }
  0x1e   : > { %s830_s22 = sand.u32 (!%p203_p3), 1, %s713_s13  }
  0x1f   : > { %s498_s6 = sshll.u32 (!%p203_p3), %s830_s22, 3  ;;  %s209_s7 = scalar_lea.sflag (!%p203_p3), [#allocation3], %s830_s22 }
  0x20   : > { %s212_s8 = scalar_lea.vmem (!%p203_p3), [#allocation2], %s498_s6 }
  0x21   : > { %696 = dma.done.wait (%p800_p8), %s209_s7, 128  }
  0x22   : > { %698 = vsyncadd (%p800_p8), %s209_s7, 4294967168  ;;  %s219_s29 = scalar_lea.sflag [#allocation6], %s830_s22  ;;  %s839_s28 = scalar_lea.vmem [#allocation5], %s498_s6 }
  0x23   : > { %700 = dma.done.wait (%p800_p8), %s219_s29, 128  }
  0x24   : > { %702 = vsyncadd (%p800_p8), %s219_s29, 4294967168  ;;  %v731_v0 = vmov 0   ;;  %v314_v1 = vld [vmem:[%s896_s0] sm:$0xf]  ;;  %v254_v2 = vld [vmem:[%s212_s8] sm:$0xff]  ;;  %vm261_vm0 = vcmask 1043456  }
  0x25   : > { %576 = vset.pattern.permute.xlu0 %v731_v0  ;;  %256 = vst [vmem:[#allocation1] ss:$2 sm:$0xff] %v254_v2  ;;  %v732_v46 = vmov 839922192   ;;  %v315_v49 = vld [vmem:[%s839_s28] sm:$0xff]  ;;  %s500_s24 = sshll.u32 %s830_s22, 1 }
  0x26   : > { %319 = vperm.xlu0 %576, %v314_v1   ;;  %v322_v47 = vunpack.c.l.s4 %v732_v46  ;;  %s502_s10 = sshll.u32 %s721_s15, 1  ;;  %s250_s21 = scalar_lea.vmem [#allocation7], %s500_s24  ;;  %vm352_vm1 = vcmask 1040384  }
  0x27   : > { %s373_s19 = scalar_lea.hbm %s899_s3, %s502_s10  ;;  %s375_s23 = sshll.u32 %s250_s21, 4  ;;  %s376_s23 = int_to_ptr.vmem [resolvable:$true] %s375_s23 }
  0x28   : > { %v323_v50 = vunpack.c.0.s8 %v322_v47  ;;  %s377_s4 = sshll.u32 %s373_s19, 4  ;;  %s361_s15 = scalar_lea.sflag [#allocation4], %s830_s22  ;;  %s378_s4 = int_to_ptr.hbm [resolvable:$true] %s377_s4 }
  0x29   : > { %s657_s5 = sshra.s32 %s378_s4, 4  ;;  %s663_s29 = scalar_lea.hbm %s899_s3, 4  ;;  %s658_s5 = int_to_ptr.hbm [resolvable:$true] %s657_s5 }
  0x2a   : > { %s659_s6 = scalar_lea.hbm %s658_s5, 2  ;;  %p664_p7 = scmp.lt.s32.totalorder %s658_s5, %s899_s3 }
  0x2b   : > { %p660_p4 = scmp.ne.s32.totalorder %s658_s5, %s659_s6  ;;  %p665_p8 = scmp.lt.s32.totalorder %s663_s29, %s659_s6 }
  0x2c   : > { %v258_v3 = vld.sshfl [vmem:[#allocation1 + $0x8] sm:$0xff pattern:$0x75316420]  ;;  %v257_v5 = vld.sshfl [vmem:[#allocation1] sm:$0xff pattern:$0x75316420] }
  0x2d   : > { %v269_v4 = vsel %vm261_vm0, %v258_v3, -inf  ;;  %v262_v7 = vsel %vm261_vm0, %v257_v5, -inf  ;;  %p661_p5 = pnand %p660_p4, %p804_p9  ;;  %p666_p10 = por %p665_p8, %p664_p7 }
  0x2e   : > { %v270_v6 = vrot.slane %v269_v4, 4  ;;  %v263_v8 = vrot.slane %v262_v7, 4 }
  0x2f   : > { %p662_p6 = pneg %p661_p5 }
  0x30   : > { %v271_v9 = vmax.f32 %v269_v4, %v270_v6  ;;  %v264_v10 = vmax.f32 %v262_v7, %v263_v8  ;;  %v355_v7 = vlaneseq }
  0x31   : > { %p667_p13 = pnand %p666_p10, %p662_p6 }
  0x32   : > { %v272_v11 = vrot.slane %v271_v9, 2  ;;  %v265_v12 = vrot.slane %v264_v10, 2  ;;  %vm357_vm2 = vcmp.lt.s32.totalorder %v355_v7, 256 }
  0x34   : > { %v273_v13 = vmax.f32 %v271_v9, %v272_v11  ;;  %v266_v14 = vmax.f32 %v264_v10, %v265_v12 }
  0x36   : > { %v274_v15 = vrot.slane %v273_v13, 1  ;;  %v267_v16 = vrot.slane %v266_v14, 1 }
  0x38   : > { %v275_v17 = vmax.f32 %v273_v13, %v274_v15  ;;  %v268_v18 = vmax.f32 %v266_v14, %v267_v16 }
  0x3a   : > { %v278_v19 = vrot.slane %v275_v17, 4 }
  0x3c   : > { %v279_v20 = vsel %vm261_vm0, %v268_v18, %v278_v19 }
  0x3d   : > { %v281_v21 = vsub.f32 %v254_v2, %v279_v20 }
  0x3f   : > { %v282_v22 = vmul.f32 1.442695, %v281_v21 }
  0x41   : > { %577 = vpow2.f32 %v282_v22 }
  0x47   : > { %v578_v23 = vpop.eup %577 }
  0x48   : > { %285 = vst [vmem:[#allocation1] ss:$2 sm:$0xff] %v578_v23 }
  0x4f   : > { %v287_v24 = vld.sshfl [vmem:[#allocation1 + $0x8] sm:$0xff pattern:$0x75316420]  ;;  %v286_v26 = vld.sshfl [vmem:[#allocation1] sm:$0xff pattern:$0x75316420] }
  0x50   : > { %v297_v25 = vsel %vm261_vm0, %v287_v24, 0.0  ;;  %v290_v28 = vsel %vm261_vm0, %v286_v26, 0.0 }
  0x51   : > { %v298_v27 = vrot.slane %v297_v25, 4  ;;  %v291_v29 = vrot.slane %v290_v28, 4 }
  0x53   : > { %v299_v30 = vadd.f32 %v298_v27, %v297_v25  ;;  %v292_v31 = vadd.f32 %v291_v29, %v290_v28 }
  0x55   : > { %v300_v32 = vrot.slane %v299_v30, 2  ;;  %v293_v33 = vrot.slane %v292_v31, 2 }
  0x57   : > { %v301_v34 = vadd.f32 %v300_v32, %v299_v30  ;;  %v294_v35 = vadd.f32 %v293_v33, %v292_v31 }
  0x59   : > { %v302_v36 = vrot.slane %v301_v34, 1  ;;  %v295_v37 = vrot.slane %v294_v35, 1 }
  0x5b   : > { %v303_v38 = vadd.f32 %v302_v36, %v301_v34  ;;  %v296_v39 = vadd.f32 %v295_v37, %v294_v35 }
  0x5d   : > { %579 = vlog2.f32 %v303_v38 }
  0x5e   : > { %581 = vlog2.f32 %v296_v39 }
  0x63   : > { %v580_v40 = vpop.eup %579 }
  0x64   : > { %v307_v41 = vmul.f32 0.6931472, %v580_v40  ;;  %v582_v42 = vpop.eup %581 }
  0x65   : > { %v305_v43 = vmul.f32 0.6931472, %v582_v42 }
  0x66   : > { %v310_v44 = vrot.slane %v307_v41, 4 }
  0x68   : > { %v311_v45 = vsel %vm261_vm0, %v305_v43, %v310_v44 }
  0x69   : > { %v313_v48 = vsub.f32 %v281_v21, %v311_v45 }
  0x6b   : > { %v316_v51 = vmul.f32 %v315_v49, %v313_v48 }
  0x98   : > { %v320_v52 = vpop.permute.xlu0 %319 }
  0x99   : > { %v324_v53 = vperm.slane %v320_v52, %v323_v50 }
  0x9b   : > { %v326_v54 = vmul.f32 %v324_v53, %v316_v51 }
  0x9d   : > { %328 = vst [vmem:[#allocation1] ss:$2 sm:$0xff] %v326_v54 }
  0xa4   : > { %v329_v55 = vld.sshfl [vmem:[#allocation1] sm:$0xff pattern:$0x75316420]  ;;  %v330_v56 = vld.sshfl [vmem:[#allocation1 + $0x8] sm:$0xff pattern:$0x75316420] }
  0xa5   : > { %v333_v57 = vsel %vm261_vm0, %v329_v55, 0.0  ;;  %v340_v58 = vsel %vm261_vm0, %v330_v56, 0.0 }
  0xa6   : > { %v334_v59 = vrot.slane %v333_v57, 4  ;;  %v341_v60 = vrot.slane %v340_v58, 4 }
  0xa8   : > { %v335_v61 = vadd.f32 %v334_v59, %v333_v57  ;;  %v342_v62 = vadd.f32 %v341_v60, %v340_v58 }
  0xaa   : > { %v336_v63 = vrot.slane %v335_v61, 2  ;;  %v343_v0 = vrot.slane %v342_v62, 2 }
  0xac   : > { %v337_v1 = vadd.f32 %v336_v63, %v335_v61  ;;  %v344_v2 = vadd.f32 %v343_v0, %v342_v62 }
  0xae   : > { %v338_v3 = vrot.slane %v337_v1, 1  ;;  %v345_v4 = vrot.slane %v344_v2, 1 }
  0xb0   : > { %v339_v5 = vadd.f32 %v338_v3, %v337_v1  ;;  %v346_v6 = vadd.f32 %v345_v4, %v344_v2 }
  0xb2   : > { %v348_v8 = vsub.f32 0.0, %v346_v6  ;;  %v347_v9 = vsub.f32 0.0, %v339_v5 }
  0xb4   : > { %v351_v10 = vrot.slane %v348_v8, 7 }
  0xb6   : > { %v353_v11 = vsel %vm352_vm1, %v347_v9, %v351_v10 }
  0xb7   : > { %359 = vst.msk [vmem:[%s250_s21] sm:$0x3] %vm357_vm2, %v353_v11 }
  0xb8   : > { %670 = shalt.err (!%p667_p13)
}
  0xb9   : > { %511 = dma.vmem_to_hbm [thread:$0]  (%p804_p9), %s376_s23, 32, %s378_s4, %s361_s15  }
  0xba PF: > { %s389_s22 = sand.u32 1, %s709_s12   ;;  %p521_p0 = pnand %p490_p12, %p811_p11 }
  0xbb   : > { %s390_s9 = scalar_lea.sflag [#allocation4], %s389_s22 }
  0xbc   : > { %p522_p1 = pneg %p521_p0 }
  0xbe   : > { %704 = dma.done.wait (%p522_p1), %s390_s9, 32  }
  0xbf   : > { %706 = vsyncadd (%p522_p1), %s390_s9, 4294967264  ;;  %s22_s17 = sadd.s32 1, %s729_s17   ;;  %s904_s12 = smov %s713_s13 }
  0xc0   : > { %p19_p2 = scmp.ge.s32.totalorder %s22_s17, 4   ;;  %s905_s13 = smov %s717_s14 }
  0xc1   : > { %s906_s14 = smov %s809_s26  ;;  %s907_s15 = smov %s725_s16 }
  0xc2   : > { %s908_s16 = smov %s910_s20  ;;  %21 = sbr.rel (!%p19_p2) target bundleno = 8 (0x8), region = 90 }
  0xc7   :  { %396 = vsyncpa [#allocation3], 1 }
  0xc8   :  { %398 = vsyncpa [#allocation3 + $0x1], 1 }
  0xc9   :  { %399 = vsyncpa [#allocation6], 1 }
  0xca   :  { %401 = vsyncpa [#allocation6 + $0x1], 1 }
  0xcb   :  { %402 = vsyncpa [#allocation4], 1 }
  0xcc   :  { %404 = vsyncpa [#allocation4 + $0x1], 1 }

</bundles_post_ra>
